<compile_context>
chip_gen: v7x
topology: tpu7x:2x2x1
jax: 0.10.0
libtpu: 0.0.40
codegen_flags: <defaults>
</compile_context>

<pallas_src>
import functools

import jax
import jax.numpy as jnp
import numpy as np
from jax.experimental import pallas as pl
from jax.experimental.pallas import tpu as pltpu


def _round_up(x, m):
    return (x + m - 1) // m * m


def _cdiv(a, b):
    return -(-a // b)


# ---------------------------------------------------------------------------
# Row tiling / VMEM budgeting
# ---------------------------------------------------------------------------
def _row_tiling(bs, h, in_itemsize, tm_max):
    """Balanced row tiles: waste < 16 rows (handled by Pallas ragged tail),
    >=2 grid steps whenever possible (megacore on v7x), and the double-buffered
    hidden block kept well inside scoped VMEM."""
    tm_max = max(16, (tm_max // 16) * 16)
    # keep 2 * tm * H * itemsize (double-buffered hidden) under ~24 MiB
    vmem_rows = max(16, (((24 << 20) // max(1, 2 * h * in_itemsize)) // 16) * 16)
    tm_cap = min(tm_max, vmem_rows)
    n = _cdiv(bs, tm_cap)
    if n == 1 and bs > 16:
        n = 2                      # >=2 grid steps -> both TCs on v7x
    tm = min(tm_cap, _round_up(_cdiv(bs, n), 16))
    grid_m = _cdiv(bs, tm)
    return tm, grid_m


def _vmem_limit(tm, h, tp, in_itemsize, out_bytes_per_row):
    need = (2 * tm * h * in_itemsize          # hidden rows (double buffered)
            + 2 * tm * out_bytes_per_row      # outputs (double buffered)
            + 2 * (h * tp * 2 + tp * 4)       # W_eff (bf16) + b_eff (f32)
            + (2 << 20))                      # headroom
    return int(min(64 << 20, max(32 << 20, need)))


# ---------------------------------------------------------------------------
# Kernel 1: plain emission tile = cast(hidden) @ W_eff + b_eff (lane-dense tags)
# ---------------------------------------------------------------------------
def _emission_kernel(h_ref, w_ref, b_ref, out_ref):
    h = h_ref[...].astype(jnp.bfloat16)      # in-kernel cast (hidden streamed once)
    acc = jnp.dot(h, w_ref[...], preferred_element_type=jnp.float32)
    out_ref[...] = (acc + b_ref[...]).astype(out_ref.dtype)


def vpn_emission(hidden, w_eff, b_eff, num_tags, *, tm_max=1024):
    """hidden: [BS, H] (native dtype); w_eff: [H, TP] (bf16); b_eff: [1, TP] f32,
    TP a multiple of 128.  Returns f32 emission scores [BS, num_tags]."""
    BS, H = hidden.shape
    H2, TP = w_eff.shape
    assert H2 == H and TP % 128 == 0 and num_tags <= TP
    if w_eff.dtype != jnp.bfloat16:
        w_eff = w_eff.astype(jnp.bfloat16)   # no-op when params pre-store bf16
    if b_eff.dtype != jnp.float32:
        b_eff = b_eff.astype(jnp.float32)

    tm, grid_m = _row_tiling(BS, H, hidden.dtype.itemsize, tm_max)

    out = pl.pallas_call(
        _emission_kernel,
        out_shape=jax.ShapeDtypeStruct((BS, TP), jnp.float32),
        grid_spec=pltpu.PrefetchScalarGridSpec(
            num_scalar_prefetch=0,
            grid=(grid_m,),
            in_specs=[
                pl.BlockSpec((tm, H), lambda i: (i, 0)),   # hidden rows (native dtype)
                pl.BlockSpec((H, TP), lambda i: (0, 0)),   # constant block -> fetched once
                pl.BlockSpec((1, TP), lambda i: (0, 0)),
            ],
            out_specs=pl.BlockSpec((tm, TP), lambda i: (i, 0)),
        ),
        compiler_params=pltpu.CompilerParams(
            dimension_semantics=("parallel",),
            vmem_limit_bytes=_vmem_limit(tm, H, TP, hidden.dtype.itemsize, TP * 4),
        ),
    )(hidden, w_eff, b_eff)
    return out[:, :num_tags]


# ---------------------------------------------------------------------------
# Kernel 2: fused epilogue — per-row argmax tag + per-row cross-entropy NLL,
# so the [BS, 128] emission never hits HBM.
# ---------------------------------------------------------------------------
def _fused_kernel(h_ref, w_ref, b_ref, lbl_ref, pred_ref, nll_ref, *, num_tags):
    h = h_ref[...].astype(jnp.bfloat16)
    acc = jnp.dot(h, w_ref[...], preferred_element_type=jnp.float32) + b_ref[...]
    tm, TP = acc.shape

    lane = jax.lax.broadcasted_iota(jnp.int32, (tm, TP), 1)
    valid = lane < num_tags
    masked = jnp.where(valid, acc, -jnp.inf)          # pad lanes -> -inf

    m = jnp.max(masked, axis=-1, keepdims=True)
    # argmax (first maximal index) via a float min-reduce on the XLU
    idx = jnp.where((masked == m) & valid, lane.astype(jnp.float32),
                    jnp.float32(TP))
    pred_ref[...] = jnp.min(idx, axis=-1, keepdims=True).astype(jnp.int32)

    # CrossEntropy pieces: per-row logsumexp and the label-gathered logit
    lse = m + jnp.log(jnp.sum(jnp.exp(masked - m), axis=-1, keepdims=True))
    picked = jnp.sum(jnp.where(lane == lbl_ref[...], acc, 0.0),
                     axis=-1, keepdims=True)
    nll_ref[...] = lse - picked


def vpn_tags_and_loss(hidden, w_eff, b_eff, labels, num_tags, *, tm_max=1024):
    """Returns (pred_tags [BS] int32, nll [BS] f32)."""
    BS, H = hidden.shape
    H2, TP = w_eff.shape
    assert H2 == H and TP % 128 == 0 and num_tags <= TP
    if w_eff.dtype != jnp.bfloat16:
        w_eff = w_eff.astype(jnp.bfloat16)
    if b_eff.dtype != jnp.float32:
        b_eff = b_eff.astype(jnp.float32)
    labels2d = labels.reshape(BS, 1).astype(jnp.int32)

    tm, grid_m = _row_tiling(BS, H, hidden.dtype.itemsize, tm_max)

    pred, nll = pl.pallas_call(
        functools.partial(_fused_kernel, num_tags=num_tags),
        out_shape=(jax.ShapeDtypeStruct((BS, 1), jnp.int32),
                   jax.ShapeDtypeStruct((BS, 1), jnp.float32)),
        grid_spec=pltpu.PrefetchScalarGridSpec(
            num_scalar_prefetch=0,
            grid=(grid_m,),
            in_specs=[
                pl.BlockSpec((tm, H), lambda i: (i, 0)),   # hidden rows
                pl.BlockSpec((H, TP), lambda i: (0, 0)),   # effective head (bf16)
                pl.BlockSpec((1, TP), lambda i: (0, 0)),   # effective bias (f32)
                pl.BlockSpec((tm, 1), lambda i: (i, 0)),   # labels per row
            ],
            out_specs=[pl.BlockSpec((tm, 1), lambda i: (i, 0)),
                       pl.BlockSpec((tm, 1), lambda i: (i, 0))],
        ),
        compiler_params=pltpu.CompilerParams(
            dimension_semantics=("parallel",),
            vmem_limit_bytes=_vmem_limit(tm, H, TP, hidden.dtype.itemsize,
                                         TP * 4 + 16),
        ),
    )(hidden, w_eff, b_eff, labels2d)
    return pred[:, 0], nll[:, 0]


# ---------------------------------------------------------------------------
# Fold the static entity->words selection into the MLM vocab head (done once).
# ---------------------------------------------------------------------------
def build_effective_head(w_vocab, b_vocab, entity_id_to_words_id, *, sum_op, top_k):
    """emission[:, t] = scale * sum_j freq_j * (hidden @ W_vocab + b_vocab)[:, w_j]
                      = hidden @ W_eff[:, t] + b_eff[0, t].
    Built once with exact f32 gather+weighted-sum, zero-padded on the tag axis to
    128 lanes; the MXU operand is stored pre-cast to bf16 (bias stays f32)."""
    H, V = w_vocab.shape
    T = len(entity_id_to_words_id)
    TP = max(128, _round_up(T, 128))
    b_flat = b_vocab.reshape(-1)

    w_cols, b_vals = [], []
    for t in range(T):
        wids, freqs = entity_id_to_words_id[t]
        wids = jnp.asarray(wids, jnp.int32)
        if sum_op == "average":
            # NB: the torch 'average' branch is an *unweighted sum* over the
            # selected words (no division) -- reproduced exactly here.
            wts, scale = jnp.ones((len(freqs),), jnp.float32), 1.0
        elif sum_op == "weighted":
            wts, scale = jnp.asarray(freqs, jnp.float32), float(top_k)
        else:
            raise ValueError("incorrect sum_op!")
        w_cols.append(scale * jnp.sum(w_vocab[:, wids] * wts[None, :], axis=-1))
        b_vals.append(scale * jnp.sum(b_flat[wids] * wts))

    w_eff = jnp.stack(w_cols, axis=-1)              # [H, T]
    b_eff = jnp.stack(b_vals).reshape(1, T)         # [1, T]
    w_eff = jnp.pad(w_eff, ((0, 0), (0, TP - T)))   # lane-dense tag axis
    b_eff = jnp.pad(b_eff, ((0, 0), (0, TP - T)))
    return w_eff.astype(jnp.bfloat16), b_eff.astype(jnp.float32)


# ---------------------------------------------------------------------------
# Vpn.forward equivalent (non-CRF paths)
# ---------------------------------------------------------------------------
def vpn_forward(params, input_ids, labels=None, attention_mask=None,
                *, sum_op="weighted"):
    B, S = input_ids.shape
    # TODO(synk): the full BERT encoder + MLM transform has no compact Pallas port
    # here; hidden states are modeled as an embedding lookup feeding the
    # (pre-contracted) vocab head.
    hidden = jnp.take(params["embedding"], input_ids.reshape(-1), axis=0)  # [B*S, H]

    if sum_op == "average":
        w_eff, b_eff = params["w_eff_avg"], params["b_eff_avg"]
    elif sum_op == "weighted":
        w_eff, b_eff = params["w_eff_weighted"], params["b_eff_weighted"]
    else:
        raise ValueError("incorrect sum_op!")

    num_tags = params["num_tags"]
    lbl = (labels.reshape(-1) if labels is not None
           else jnp.zeros((B * S,), jnp.int32))
    pred, nll = vpn_tags_and_loss(hidden, w_eff, b_eff, lbl, num_tags)

    if labels is not None:
        # TODO(synk): use_crf=True (CRF forward / viterbi decode) is not implemented;
        # only the CrossEntropyLoss / argmax branches (use_crf=False) are ported.
        return jnp.mean(nll)                 # == torch CrossEntropyLoss (mean)
    return pred.reshape(B, S)                # output_label


# ---------------------------------------------------------------------------
if __name__ == "__main__":
    B, S, H, V, T = 2, 8, 32, 512, 8
    top_k = 4
    key = jax.random.PRNGKey(0)
    k1, k2, k3, k4, k5 = jax.random.split(key, 5)

    # deterministic synthetic parameters (stand-in for the pretrained backbone)
    embedding = jax.random.normal(k1, (V, H), jnp.float32) * 0.02
    w_vocab = jax.random.normal(k2, (H, V), jnp.float32) * 0.02
    b_vocab = jax.random.normal(k3, (1, V), jnp.float32) * 0.02

    # entity_id -> ([word ids], [word freqs]) mapping
    entity_id_to_words_id = {
        t: ([(t * 7) % V, (t * 7 + 3) % V, (t * 7 + 101) % V], [0.5, 0.3, 0.2])
        for t in range(T)
    }

    w_eff_w, b_eff_w = build_effective_head(
        w_vocab, b_vocab, entity_id_to_words_id, sum_op="weighted", top_k=top_k)
    w_eff_a, b_eff_a = build_effective_head(
        w_vocab, b_vocab, entity_id_to_words_id, sum_op="average", top_k=top_k)

    params = dict(embedding=embedding, num_tags=T,
                  w_eff_weighted=w_eff_w, b_eff_weighted=b_eff_w,
                  w_eff_avg=w_eff_a, b_eff_avg=b_eff_a)

    input_ids = jax.random.randint(k4, (B, S), 0, V, jnp.int32)
    labels = jax.random.randint(k5, (B, S), 0, T, jnp.int32)
    attention_mask = jnp.ones((B, S), jnp.int32)

    # training path (labels given, use_crf=False -> CrossEntropyLoss)
    loss = vpn_forward(params, input_ids, labels=labels,
                       attention_mask=attention_mask, sum_op="weighted")
    # inference path (no labels -> argmax tag per token)
    preds = vpn_forward(params, input_ids, labels=None,
                        attention_mask=attention_mask, sum_op="weighted")
    jax.block_until_ready((loss, preds))
    assert preds.shape == (B, S)
    assert np.isfinite(float(loss))

    # reference check (host float64) of the pre-contracted head vs torch-style gather/sum
    hidden = jnp.take(embedding, input_ids.reshape(-1), axis=0)
    h64 = np.asarray(hidden, np.float64)
    pred64 = h64 @ np.asarray(w_vocab, np.float64) + np.asarray(b_vocab, np.float64)
    ref = np.zeros((B * S, T), np.float64)
    for t, (wids, freqs) in entity_id_to_words_id.items():
        ref[:, t] = top_k * (pred64[:, wids] @ np.asarray(freqs, np.float64))

    ker = np.asarray(vpn_emission(hidden, w_eff_w, b_eff_w, T))
    np.testing.assert_allclose(ker, ref, rtol=2e-2, atol=5e-4)  # bf16 MXU tolerance

    # ragged-tail path (row count not a multiple of the block): masked tail store
    ker13 = np.asarray(vpn_emission(hidden[:13], w_eff_w, b_eff_w, T))
    np.testing.assert_allclose(ker13, ref[:13], rtol=2e-2, atol=5e-4)

    # fused epilogue checks: CE loss vs host reference, argmax vs kernel emission
    ref_max = ref.max(-1, keepdims=True)
    ref_lse = np.log(np.exp(ref - ref_max).sum(-1)) + ref_max[:, 0]
    ref_nll = ref_lse - np.take_along_axis(
        ref, np.asarray(labels).reshape(-1, 1), axis=-1)[:, 0]
    np.testing.assert_allclose(float(loss), float(ref_nll.mean()),
                               rtol=2e-2, atol=5e-3)
    assert np.array_equal(np.asarray(preds).reshape(-1), np.argmax(ker, axis=-1))

    print("KERNEL_OK")
</pallas_src>

<mosaic_0001>
module attributes {stable_mosaic.version = 11 : i64} {
  func.func @_fused_kernel(%arg0: i32, %arg1: memref<16x32xf32, #tpu.memory_space<vmem>>, %arg2: memref<32x128xbf16, #tpu.memory_space<vmem>>, %arg3: memref<1x128xf32, #tpu.memory_space<vmem>>, %arg4: memref<16x1xi32, #tpu.memory_space<vmem>>, %arg5: memref<16x1xi32, #tpu.memory_space<vmem>>, %arg6: memref<16x1xf32, #tpu.memory_space<vmem>>) attributes {dimension_semantics = [#tpu.dimension_semantics<parallel>], iteration_bounds = array<i64: 1>, scalar_prefetch = 0 : i64, scratch_operands = 0 : i64, tpu.core_type = #tpu.core_type<tc>, window_params = [{transform_indices = @transform_0, window_bounds = array<i64: 16, 32>}, {pipeline_mode = #tpu.pipeline_mode<synchronous>, transform_indices = @transform_1, window_bounds = array<i64: 32, 128>}, {pipeline_mode = #tpu.pipeline_mode<synchronous>, transform_indices = @transform_2, window_bounds = array<i64: 1, 128>}, {transform_indices = @transform_3, window_bounds = array<i64: 16, 1>}, {transform_indices = @transform_4, window_bounds = array<i64: 16, 1>}, {transform_indices = @transform_5, window_bounds = array<i64: 16, 1>}]} {
    %c0 = arith.constant 0 : index
    %c0_0 = arith.constant 0 : index
    %0 = vector.load %arg1[%c0, %c0_0] : memref<16x32xf32, #tpu.memory_space<vmem>>, vector<16x32xf32>
    %1 = arith.truncf %0 : vector<16x32xf32> to vector<16x32xbf16>
    %c0_1 = arith.constant 0 : index
    %c0_2 = arith.constant 0 : index
    %2 = vector.load %arg2[%c0_1, %c0_2] : memref<32x128xbf16, #tpu.memory_space<vmem>>, vector<32x128xbf16>
    %cst = arith.constant dense<0.000000e+00> : vector<16x128xf32>
    %3 = tpu.matmul %1, %2, %cst {dimension_numbers = #tpu.dot_dimension_numbers<[1], [0], [0], [1], [0, 0, 1, 1], [], []>} : vector<16x32xbf16>, vector<32x128xbf16>, vector<16x128xf32> -> vector<16x128xf32>
    %c0_3 = arith.constant 0 : index
    %c0_4 = arith.constant 0 : index
    %4 = vector.load %arg3[%c0_3, %c0_4] : memref<1x128xf32, #tpu.memory_space<vmem>>, vector<1x128xf32>
    %5 = vector.broadcast %4 : vector<1x128xf32> to vector<16x128xf32>
    %6 = arith.addf %3, %5 : vector<16x128xf32>
    %7 = tpu.iota {dimensions = array<i32: 1>} : vector<16x128xi32>
    %c8_i32 = arith.constant 8 : i32
    %8 = vector.broadcast %c8_i32 : i32 to vector<16x128xi32>
    %9 = arith.cmpi slt, %7, %8 : vector<16x128xi32>
    %cst_5 = arith.constant 0xFF800000 : f32
    %10 = vector.broadcast %cst_5 : f32 to vector<16x128xf32>
    %11 = arith.select %9, %6, %10 : vector<16x128xi1>, vector<16x128xf32>
    %cst_6 = arith.constant dense<0xFF800000> : vector<16xf32>
    %12 = vector.multi_reduction <maximumf>, %11, %cst_6 [1] : vector<16x128xf32> to vector<16xf32>
    %13 = vector.shape_cast %12 : vector<16xf32> to vector<16x1xf32>
    %14 = vector.broadcast %13 : vector<16x1xf32> to vector<16x128xf32>
    %15 = arith.cmpf oeq, %11, %14 : vector<16x128xf32>
    %16 = arith.andi %15, %9 : vector<16x128xi1>
    %17 = arith.sitofp %7 : vector<16x128xi32> to vector<16x128xf32>
    %cst_7 = arith.constant 1.280000e+02 : f32
    %18 = vector.broadcast %cst_7 : f32 to vector<16x128xf32>
    %19 = arith.select %16, %17, %18 : vector<16x128xi1>, vector<16x128xf32>
    %cst_8 = arith.constant dense<0x7F800000> : vector<16xf32>
    %20 = vector.multi_reduction <minimumf>, %19, %cst_8 [1] : vector<16x128xf32> to vector<16xf32>
    %21 = vector.shape_cast %20 : vector<16xf32> to vector<16x1xf32>
    %22 = arith.fptosi %21 : vector<16x1xf32> to vector<16x1xi32>
    %c0_9 = arith.constant 0 : index
    %c0_10 = arith.constant 0 : index
    %23 = vector.load %arg5[%c0_9, %c0_10] : memref<16x1xi32, #tpu.memory_space<vmem>>, vector<16x1xi32>
    tpu.vector_store %arg5[%c0_9, %c0_10], %22 {strides = array<i32>} : memref<16x1xi32, #tpu.memory_space<vmem>>, vector<16x1xi32>,
    %24 = vector.broadcast %13 : vector<16x1xf32> to vector<16x128xf32>
    %25 = arith.subf %11, %24 : vector<16x128xf32>
    %26 = math.exp %25 : vector<16x128xf32>
    %cst_11 = arith.constant dense<0.000000e+00> : vector<16xf32>
    %27 = vector.multi_reduction <add>, %26, %cst_11 [1] : vector<16x128xf32> to vector<16xf32>
    %28 = vector.shape_cast %27 : vector<16xf32> to vector<16x1xf32>
    %29 = math.log %28 : vector<16x1xf32>
    %30 = arith.addf %13, %29 : vector<16x1xf32>
    %c0_12 = arith.constant 0 : index
    %c0_13 = arith.constant 0 : index
    %31 = vector.load %arg4[%c0_12, %c0_13] : memref<16x1xi32, #tpu.memory_space<vmem>>, vector<16x1xi32>
    %32 = vector.broadcast %31 : vector<16x1xi32> to vector<16x128xi32>
    %33 = arith.cmpi eq, %7, %32 : vector<16x128xi32>
    %cst_14 = arith.constant 0.000000e+00 : f32
    %34 = vector.broadcast %cst_14 : f32 to vector<16x128xf32>
    %35 = arith.select %33, %6, %34 : vector<16x128xi1>, vector<16x128xf32>
    %cst_15 = arith.constant dense<0.000000e+00> : vector<16xf32>
    %36 = vector.multi_reduction <add>, %35, %cst_15 [1] : vector<16x128xf32> to vector<16xf32>
    %37 = vector.shape_cast %36 : vector<16xf32> to vector<16x1xf32>
    %38 = arith.subf %30, %37 : vector<16x1xf32>
    %c0_16 = arith.constant 0 : index
    %c0_17 = arith.constant 0 : index
    %39 = vector.load %arg6[%c0_16, %c0_17] : memref<16x1xf32, #tpu.memory_space<vmem>>, vector<16x1xf32>
    tpu.vector_store %arg6[%c0_16, %c0_17], %38 {strides = array<i32>} : memref<16x1xf32, #tpu.memory_space<vmem>>, vector<16x1xf32>,
    return
  }
  func.func @transform_0(%arg0: i32) -> (i32, i32) {
    %c0_i32 = arith.constant 0 : i32
    %c0_i32_0 = arith.constant 0 : i32
    return %arg0, %c0_i32 : i32, i32
  }
  func.func @transform_1(%arg0: i32) -> (i32, i32) {
    %c0_i32 = arith.constant 0 : i32
    %c0_i32_0 = arith.constant 0 : i32
    %c0_i32_1 = arith.constant 0 : i32
    return %c0_i32, %c0_i32_0 : i32, i32
  }
  func.func @transform_2(%arg0: i32) -> (i32, i32) {
    %c0_i32 = arith.constant 0 : i32
    %c0_i32_0 = arith.constant 0 : i32
    %c0_i32_1 = arith.constant 0 : i32
    return %c0_i32, %c0_i32_0 : i32, i32
  }
  func.func @transform_3(%arg0: i32) -> (i32, i32) {
    %c0_i32 = arith.constant 0 : i32
    %c0_i32_0 = arith.constant 0 : i32
    return %arg0, %c0_i32 : i32, i32
  }
  func.func @transform_4(%arg0: i32) -> (i32, i32) {
    %c0_i32 = arith.constant 0 : i32
    %c0_i32_0 = arith.constant 0 : i32
    return %arg0, %c0_i32 : i32, i32
  }
  func.func @transform_5(%arg0: i32) -> (i32, i32) {
    %c0_i32 = arith.constant 0 : i32
    %c0_i32_0 = arith.constant 0 : i32
    return %arg0, %c0_i32 : i32, i32
  }
}

</mosaic_0001>

<bundles_post_ra>
// kernel: tpu_custom_call.1
= control target key start
LH: loop header
LB: loop body
LE: loop exit
PB: predicated region body
PF: predicated region fallthrough
CT: control target
= control target key end

     0   :  { %11 = vsyncpa [#allocation3], 0  ;;  %s236_s18 = smov [#allocation2]   ;;  %s319_s0 = inlined_call_operand.vmem [shape: f32[16,32], index: 0, kind: input, shape index: {}]   ;;  %s320_s1 = inlined_call_operand.hbm [shape: bf16[32,128], index: 1, kind: input, shape index: {}]   ;;  %s321_s2 = inlined_call_operand.vmem [shape: f32[1,128], index: 2, kind: input, shape index: {}]   ;;  %s322_s3 = inlined_call_operand.vmem [shape: s32[16,1], index: 3, kind: input, shape index: {}]   ;;  %s323_s4 = inlined_call_operand.vmem [shape: s32[16,1], index: 4, kind: output, shape index: {0}]   ;;  %s324_s5 = inlined_call_operand.vmem [shape: f32[16,1], index: 5, kind: output, shape index: {1}]  }
   0x1   :  { %s19_s19 = sshll.u32 %s236_s18, 4  ;;  %s212_s22 = scalar_lea.hbm %s320_s1, 256  ;;  %s20_s19 = int_to_ptr.vmem [resolvable:$true] %s19_s19 }
   0x2   :  { %p213_p0 = scmp.ne.s32.totalorder %s320_s1, %s212_s22  ;;  %p216_p1 = scmp.lt.u32.totalorder %s212_s22, %s320_s1 }
   0x4   :  { %p218_p2 = pnand %p216_p1, %p213_p0 }
   0x6   :  { %221 = shalt.err (!%p218_p2)
}
   0x7   :  { %s222_s27 = scalar_lea.vmem %s20_s19, 256  ;;  %p227_p4 = scmp.lt.s32.totalorder %s20_s19, %s20_s19 }
   0x8   :  { %p223_p3 = scmp.ne.s32.totalorder %s20_s19, %s222_s27  ;;  %p228_p5 = scmp.lt.s32.totalorder %s222_s27, %s222_s27 }
   0xa   :  { %p229_p6 = por %p228_p5, %p227_p4 }
   0xc   :  { %p230_p7 = pnand %p229_p6, %p223_p3 }
   0xe   :  { %233 = shalt.err (!%p230_p7)
}
   0xf   :  { %s237_s28 = smov 64   ;;  %s238_s29 = smov 4  }
  0x10   :  { %25 = dma.hbm_to_vmem [thread:$0]  %s320_s1, 256, %s20_s19, [#allocation3], %s237_s28, %s237_s28, %s238_s29  }
  0x11   :  { %234 = dma.done.wait [#allocation3], 256  }
  0x12   :  { %235 = vsyncadd [#allocation3], 4294967040  ;;  %v239_v0 = vmov 0.0   ;;  %vm240_vm0 = vmmov 0   ;;  %v241_v1 = vmov 0   ;;  %v202_v2 = vld [vmem:[#allocation2] sm:$0xff]   ;;  %v105_v9 = vlaneseq }
  0x13   :  { %182 = vmatprep.subr.bf16.mxu0 %v239_v0  ;;  %186 = vmatprep.mubr.msk.bf16.mxu0 %vm240_vm0, %v239_v0  ;;  %v203_v3 = vld [vmem:[#allocation2 + $0x8] sm:$0xff]   ;;  %v34_v4 = vld [vmem:[%s319_s0] sm:$0xff]  ;;  %vm60_vm1 = vcmask 261120   ;;  %vm127_vm9 = vcmask 7168  }
  0x14   :  { %200 = vset.pattern.permute.xlu1 %v241_v1  ;;  %201 = vset.pattern.permute.xlu0 %v241_v1  ;;  %v35_v5 = vld [vmem:[%s319_s0 + $0x8] sm:$0xff]  ;;  %v146_v6 = vld [vmem:[%s322_s3] sm:$0xff]  ;;  %v106_v10 = vand.u32 127, %v105_v9 }
  0x15   :  { %183 = vmatpush3.bf16.msra.mxu0 %v202_v2  ;;  %149 = vperm.xlu1 %200, %v146_v6   ;;  %v147_v7 = vld [vmem:[%s322_s3 + $0x8] sm:$0xff]  ;;  %v36_v8 = vpack.c.bf16 %v35_v5, %v34_v4  ;;  %v175_v11 = vld [vmem:[%s321_s2] ss:$0 sm:$0xff] }
  0x16   :  { %184 = vmatprep.subr.bf16.mxu0 %v239_v0  ;;  %vm107_vm2 = vcmp.lt.s32.totalorder %v106_v10, 8  ;;  %v118_v27 = vcvt.s32.f32 %v106_v10 }
  0x19   :  { %185 = vmatpush3.bf16.msra.mxu0 %v203_v3  ;;  %152 = vperm.xlu1 %200, %v147_v7  }
  0x1c   :  { %187 = vmatmul.mubr.msk.bf16.vlgmr.msra.gmra.mrb[0].mxu0 %vm60_vm1, %v36_v8 }
  0x94   :  { %v150_v29 = vpop.permute.xlu1 %149 }
  0x95   :  { %vm154_vm7 = vcmp.eq.s32.totalorder %v106_v10, %v150_v29 }
  0x98   :  { %v153_v32 = vpop.permute.xlu1 %152 }
  0x99   :  { %vm155_vm8 = vcmp.eq.s32.totalorder %v106_v10, %v153_v32 }
  0xef   :  { %v98_v12 = vpop.f32.mrb[0].mxu0 }
  0xf0   :  { %v99_v13 = vadd.f32 %v175_v11, %v98_v12  ;;  %v188_v14 = vpop.f32.mrb[1].mxu0 }
  0xf1   :  { %v101_v15 = vpop.f32.mrb[2].mxu0 }
  0xf2   :  { %v102_v16 = vadd.f32 %v175_v11, %v101_v15  ;;  %v189_v17 = vpop.f32.mrb[3].mxu0  ;;  %v108_v18 = vsel %vm107_vm2, %v99_v13, -inf  ;;  %v156_v33 = vsel %vm154_vm7, %v99_v13, 0.0 }
  0xf3   :  { %110 = vmax.xlane.f32.xlu0 %v108_v18 }
  0xf4   :  { %v109_v19 = vsel %vm107_vm2, %v102_v16, -inf  ;;  %v157_v34 = vsel %vm155_vm8, %v102_v16, 0.0 }
  0xf7   :  { %112 = vmax.xlane.f32.xlu0 %v109_v19 }
 0x180   :  { %v111_v20 = vpop.xlane.xlu0 %110 }
 0x181   :  { %v130_v21 = vsub.f32 %v108_v18, %v111_v20  ;;  %vm114_vm3 = vcmp.eq.f32.partialorder %v108_v18, %v111_v20 }
 0x182   :  { %vm116_vm4 = vmand %vm114_vm3, %vm107_vm2 }
 0x183   :  { %v132_v22 = vmul.f32 1.442695, %v130_v21  ;;  %v119_v30 = vsel %vm116_vm4, %v118_v27, 128.0 }
 0x184   :  { %v113_v23 = vpop.xlane.xlu0 %112 }
 0x185   :  { %204 = vpow2.f32 %v132_v22  ;;  %v131_v24 = vsub.f32 %v109_v19, %v113_v23  ;;  %vm115_vm5 = vcmp.eq.f32.partialorder %v109_v19, %v113_v23 }
 0x186   :  { %vm117_vm6 = vmand %vm115_vm5, %vm107_vm2 }
 0x187   :  { %v134_v25 = vmul.f32 1.442695, %v131_v24  ;;  %v120_v31 = vsel %vm117_vm6, %v118_v27, 128.0 }
 0x189   :  { %206 = vpow2.f32 %v134_v25 }
 0x18f   :  { %v205_v26 = vpop.eup %204 }
 0x190   :  { %136 = vadd.xlane.f32.xlu0 %v205_v26 }
 0x193   :  { %v207_v28 = vpop.eup %206 }
 0x194   :  { %121 = vmin.xlane.f32.xlu0 %v119_v30  ;;  %138 = vadd.xlane.f32.xlu1 %v207_v28 }
 0x198   :  { %123 = vmin.xlane.f32.xlu0 %v120_v31 }
 0x19c   :  { %158 = vadd.xlane.f32.xlu0 %v156_v33 }
 0x1a0   :  { %160 = vadd.xlane.f32.xlu0 %v157_v34 }
 0x21d   :  { %v137_v35 = vpop.xlane.xlu0 %136 }
 0x21e   :  { %208 = vlog2.f32 %v137_v35 }
 0x221   :  { %v139_v36 = vpop.xlane.xlu1 %138  ;;  %v122_v37 = vpop.xlane.xlu0 %121 }
 0x222   :  { %210 = vlog2.f32 %v139_v36  ;;  %v190_v38 = vtrunc.f32 %v122_v37 }
 0x224   :  { %v191_v39 = vcvt.f32.s32 %v190_v38 }
 0x225   :  { %v124_v40 = vpop.xlane.xlu0 %123 }
 0x226   :  { %128 = vst.msk [vmem:[%s323_s4] sm:$0xff] %vm127_vm9, %v191_v39  ;;  %v192_v41 = vtrunc.f32 %v124_v40 }
 0x228   :  { %v209_v42 = vpop.eup %208  ;;  %v193_v43 = vcvt.f32.s32 %v192_v41 }
 0x229   :  { %v141_v44 = vmul.f32 0.6931472, %v209_v42  ;;  %v159_v45 = vpop.xlane.xlu0 %158 }
 0x22a   :  { %129 = vst.msk [vmem:[%s323_s4 + $0x8] sm:$0xff] %vm127_vm9, %v193_v43 }
 0x22b   :  { %v144_v46 = vadd.f32 %v141_v44, %v111_v20 }
 0x22c   :  { %v211_v47 = vpop.eup %210 }
 0x22d   :  { %v143_v48 = vmul.f32 0.6931472, %v211_v47  ;;  %v162_v49 = vsub.f32 %v144_v46, %v159_v45  ;;  %v161_v51 = vpop.xlane.xlu0 %160 }
 0x22f   :  { %164 = vst.msk [vmem:[%s324_s5] sm:$0xff] %vm127_vm9, %v162_v49  ;;  %v145_v50 = vadd.f32 %v143_v48, %v113_v23 }
 0x231   :  { %v163_v52 = vsub.f32 %v145_v50, %v161_v51 }
 0x233   :  { %165 = vst.msk [vmem:[%s324_s5 + $0x8] sm:$0xff] %vm127_vm9, %v163_v52 }
 0x234   :  { %174 = vsyncpa [#allocation3], 1 }

</bundles_post_ra>
